<compile_context>
chip_gen: v7x
topology: tpu7x:2x2x1
jax: 0.10.0
libtpu: 0.0.40
codegen_flags: <defaults>
</compile_context>

<pallas_src>
import jax
import jax.numpy as jnp
import numpy as np
from jax import lax
from jax.experimental import pallas as pl
from jax.experimental.pallas import tpu as pltpu

LANES = 128              # vreg lane width (last dim)
SUBLANES = 8             # f32 sublanes per vreg
TARGET_BLOCK_ROWS = 2048  # (2048,128) f32 = 1 MiB per tile


def _round_up(x, m):
    return ((x + m - 1) // m) * m


def _make_kernel(block_rows, n_valid, needs_mask):
    """Elementwise BCE + per-block partial-sum kernel.

    block_rows / n_valid are Python ints baked into the kernel (shapes are
    static), so no scalar-prefetch SMEM argument is needed.
    """
    block_elems = block_rows * LANES

    def kernel(pred_ref, gt_ref, loss_ref, part_ref):
        p = pred_ref[...]
        g = gt_ref[...]
        loss = -(g * jnp.log(p + 1e-12) + (1.0 - g) * jnp.log(1.0 - p + 1e-12))
        loss_ref[...] = loss

        # Per-block scalar sum, embedded at [0,0] of this block's (8,128)
        # partial tile (every other element is exactly 0).  No carried state.
        ri = lax.broadcasted_iota(jnp.int32, (SUBLANES, LANES), 0)
        ci = lax.broadcasted_iota(jnp.int32, (SUBLANES, LANES), 1)
        corner = (ri == 0) & (ci == 0)
        part_ref[...] = jnp.where(corner, jnp.sum(loss), 0.0)

        if needs_mask:
            i = pl.program_id(0)

            @pl.when(i == pl.num_programs(0) - 1)
            def _():
                # Zero padded / out-of-bounds tail elements (last block only).
                # NOTE: flat index is int32 -> valid for N < 2**31 elements.
                rr = lax.broadcasted_iota(jnp.int32, (block_rows, LANES), 0)
                cc = lax.broadcasted_iota(jnp.int32, (block_rows, LANES), 1)
                flat_idx = i * block_elems + rr * LANES + cc
                masked = jnp.where(flat_idx < n_valid, loss, 0.0)
                loss_ref[...] = masked
                part_ref[...] = jnp.where(corner, jnp.sum(masked), 0.0)

    return kernel


def bce_ohem(pred, gt, top_ratio=0.3, top_weight=1.0):
    n = int(np.prod(pred.shape))
    pred_f = jnp.asarray(pred, jnp.float32).reshape(-1)
    gt_f = jnp.asarray(gt, jnp.float32).reshape(-1)

    # Pad only when N is not a multiple of the lane width; the common case
    # (N*C*H*W % 128 == 0) needs no pad -> no extra HBM copies of the inputs.
    n_lane = _round_up(n, LANES)
    if n_lane != n:
        # pad values (pred=1, gt=1) give loss ~ -1e-12 and are masked in-kernel
        pred_f = jnp.pad(pred_f, (0, n_lane - n), constant_values=1.0)
        gt_f = jnp.pad(gt_f, (0, n_lane - n), constant_values=1.0)
    rows = n_lane // LANES

    block_rows = min(TARGET_BLOCK_ROWS, _round_up(rows, SUBLANES))
    num_blocks = (rows + block_rows - 1) // block_rows
    # Mask only needed if the final block contains padded / ragged lanes.
    needs_mask = (num_blocks * block_rows * LANES) != n

    pred2 = pred_f.reshape(rows, LANES)
    gt2 = gt_f.reshape(rows, LANES)

    kernel = _make_kernel(block_rows, n, needs_mask)

    grid_spec = pltpu.PrefetchScalarGridSpec(
        num_scalar_prefetch=0,
        grid=(num_blocks,),
        in_specs=[
            pl.BlockSpec((block_rows, LANES), lambda i: (i, 0)),
            pl.BlockSpec((block_rows, LANES), lambda i: (i, 0)),
        ],
        out_specs=[
            pl.BlockSpec((block_rows, LANES), lambda i: (i, 0)),
            pl.BlockSpec((SUBLANES, LANES), lambda i: (i, 0)),
        ],
    )

    loss2, partials = pl.pallas_call(
        kernel,
        grid_spec=grid_spec,
        out_shape=(
            jax.ShapeDtypeStruct((rows, LANES), jnp.float32),
            jax.ShapeDtypeStruct((num_blocks * SUBLANES, LANES), jnp.float32),
        ),
        compiler_params=pltpu.CompilerParams(
            dimension_semantics=("parallel",)),
    )(pred2, gt2)

    mean_all = jnp.sum(partials) / n
    k = max(int(top_ratio * n), 1)
    loss_flat = loss2.reshape(-1)[:n]
    # TODO(synk): torch.topk (global top 30% selection) has no clean Pallas/Mosaic
    # equivalent (no in-kernel sort); selection uses jax.lax.top_k on the
    # Pallas-computed loss matrix.
    topk_vals = jax.lax.top_k(loss_flat, k)[0]
    return mean_all + top_weight * jnp.mean(topk_vals)


def _reference(pred, gt, top_ratio=0.3, top_weight=1.0):
    loss = -(gt * jnp.log(pred + 1e-12) +
             (1.0 - gt) * jnp.log(1.0 - pred + 1e-12)).reshape(-1)
    k = max(int(top_ratio * loss.size), 1)
    topk = jax.lax.top_k(loss, k)[0]
    return loss.mean() + top_weight * jnp.mean(topk)


if __name__ == "__main__":
    key = jax.random.PRNGKey(0)
    k1, k2 = jax.random.split(key)
    shape = (2, 4, 16, 16)                       # N, C, H, W
    pred = jax.random.uniform(k1, shape, dtype=jnp.float32,
                              minval=1e-4, maxval=1.0 - 1e-4)
    gt = jax.random.bernoulli(k2, p=0.5, shape=shape).astype(jnp.float32)

    out = jax.block_until_ready(bce_ohem(pred, gt, top_ratio=0.3, top_weight=1.0))
    ref = jax.block_until_ready(_reference(pred, gt, 0.3, 1.0))
    np.testing.assert_allclose(np.asarray(out), np.asarray(ref),
                               rtol=1e-5, atol=1e-6)
    print("KERNEL_OK")
</pallas_src>

<mosaic_0001>
module attributes {stable_mosaic.version = 11 : i64} {
  func.func @kernel(%arg0: i32, %arg1: memref<16x128xf32, #tpu.memory_space<vmem>>, %arg2: memref<16x128xf32, #tpu.memory_space<vmem>>, %arg3: memref<16x128xf32, #tpu.memory_space<vmem>>, %arg4: memref<8x128xf32, #tpu.memory_space<vmem>>) attributes {dimension_semantics = [#tpu.dimension_semantics<parallel>], iteration_bounds = array<i64: 1>, scalar_prefetch = 0 : i64, scratch_operands = 0 : i64, tpu.core_type = #tpu.core_type<tc>, window_params = [{transform_indices = @transform_0, window_bounds = array<i64: 16, 128>}, {transform_indices = @transform_1, window_bounds = array<i64: 16, 128>}, {transform_indices = @transform_2, window_bounds = array<i64: 16, 128>}, {transform_indices = @transform_3, window_bounds = array<i64: 8, 128>}]} {
    %c0 = arith.constant 0 : index
    %c0_0 = arith.constant 0 : index
    %0 = vector.load %arg1[%c0, %c0_0] : memref<16x128xf32, #tpu.memory_space<vmem>>, vector<16x128xf32>
    %c0_1 = arith.constant 0 : index
    %c0_2 = arith.constant 0 : index
    %1 = vector.load %arg2[%c0_1, %c0_2] : memref<16x128xf32, #tpu.memory_space<vmem>>, vector<16x128xf32>
    %cst = arith.constant 9.99999996E-13 : f32
    %2 = vector.broadcast %cst : f32 to vector<16x128xf32>
    %3 = arith.addf %0, %2 : vector<16x128xf32>
    %4 = math.log %3 : vector<16x128xf32>
    %5 = arith.mulf %1, %4 : vector<16x128xf32>
    %cst_3 = arith.constant 1.000000e+00 : f32
    %6 = vector.broadcast %cst_3 : f32 to vector<16x128xf32>
    %7 = arith.subf %6, %1 : vector<16x128xf32>
    %cst_4 = arith.constant 1.000000e+00 : f32
    %8 = vector.broadcast %cst_4 : f32 to vector<16x128xf32>
    %9 = arith.subf %8, %0 : vector<16x128xf32>
    %cst_5 = arith.constant 9.99999996E-13 : f32
    %10 = vector.broadcast %cst_5 : f32 to vector<16x128xf32>
    %11 = arith.addf %9, %10 : vector<16x128xf32>
    %12 = math.log %11 : vector<16x128xf32>
    %13 = arith.mulf %7, %12 : vector<16x128xf32>
    %14 = arith.addf %5, %13 : vector<16x128xf32>
    %cst_6 = arith.constant 0.000000e+00 : f32
    %15 = vector.broadcast %cst_6 : f32 to vector<16x128xf32>
    %16 = arith.subf %15, %14 : vector<16x128xf32>
    %c0_7 = arith.constant 0 : index
    %c0_8 = arith.constant 0 : index
    %17 = vector.load %arg3[%c0_7, %c0_8] : memref<16x128xf32, #tpu.memory_space<vmem>>, vector<16x128xf32>
    tpu.vector_store %arg3[%c0_7, %c0_8], %16 {strides = array<i32>} : memref<16x128xf32, #tpu.memory_space<vmem>>, vector<16x128xf32>,
    %18 = tpu.iota {dimensions = array<i32: 0>} : vector<8x128xi32>
    %19 = tpu.iota {dimensions = array<i32: 1>} : vector<8x128xi32>
    %c0_i32 = arith.constant 0 : i32
    %20 = vector.broadcast %c0_i32 : i32 to vector<8x128xi32>
    %21 = arith.cmpi eq, %18, %20 : vector<8x128xi32>
    %c0_i32_9 = arith.constant 0 : i32
    %22 = vector.broadcast %c0_i32_9 : i32 to vector<8x128xi32>
    %23 = arith.cmpi eq, %19, %22 : vector<8x128xi32>
    %24 = arith.andi %21, %23 : vector<8x128xi1>
    %25 = vector.shape_cast %16 : vector<16x128xf32> to vector<1x16x128xf32>
    %cst_10 = arith.constant dense<0.000000e+00> : vector<1xf32>
    %26 = vector.multi_reduction <add>, %25, %cst_10 [1, 2] : vector<1x16x128xf32> to vector<1xf32>
    %27 = vector.shape_cast %26 : vector<1xf32> to vector<1x1x1xf32>
    %28 = vector.extract %27[0, 0, 0] : f32 from vector<1x1x1xf32>
    %cst_11 = arith.constant 0.000000e+00 : f32
    %29 = vector.broadcast %28 : f32 to vector<8x128xf32>
    %30 = vector.broadcast %cst_11 : f32 to vector<8x128xf32>
    %31 = arith.select %24, %29, %30 : vector<8x128xi1>, vector<8x128xf32>
    %c0_12 = arith.constant 0 : index
    %c0_13 = arith.constant 0 : index
    %32 = vector.load %arg4[%c0_12, %c0_13] : memref<8x128xf32, #tpu.memory_space<vmem>>, vector<8x128xf32>
    tpu.vector_store %arg4[%c0_12, %c0_13], %31 {strides = array<i32>} : memref<8x128xf32, #tpu.memory_space<vmem>>, vector<8x128xf32>,
    return
  }
  func.func @transform_0(%arg0: i32) -> (i32, i32) {
    %c0_i32 = arith.constant 0 : i32
    %c0_i32_0 = arith.constant 0 : i32
    return %arg0, %c0_i32 : i32, i32
  }
  func.func @transform_1(%arg0: i32) -> (i32, i32) {
    %c0_i32 = arith.constant 0 : i32
    %c0_i32_0 = arith.constant 0 : i32
    return %arg0, %c0_i32 : i32, i32
  }
  func.func @transform_2(%arg0: i32) -> (i32, i32) {
    %c0_i32 = arith.constant 0 : i32
    %c0_i32_0 = arith.constant 0 : i32
    return %arg0, %c0_i32 : i32, i32
  }
  func.func @transform_3(%arg0: i32) -> (i32, i32) {
    %c0_i32 = arith.constant 0 : i32
    %c0_i32_0 = arith.constant 0 : i32
    return %arg0, %c0_i32 : i32, i32
  }
}

</mosaic_0001>

<bundles_post_ra>
// kernel: tpu_custom_call.1
= control target key start
LH: loop header
LB: loop body
LE: loop exit
PB: predicated region body
PF: predicated region fallthrough
CT: control target
= control target key end

     0   :  { %9 = vsyncpa [#allocation3], 0  ;;  %s320_s0 = inlined_call_operand.hbm [shape: f32[16,128], index: 0, kind: input, shape index: {}]   ;;  %s321_s1 = inlined_call_operand.hbm [shape: f32[16,128], index: 1, kind: input, shape index: {}]   ;;  %s322_s2 = inlined_call_operand.hbm [shape: f32[16,128], index: 2, kind: output, shape index: {0}]   ;;  %s323_s3 = inlined_call_operand.hbm [shape: f32[8,128], index: 3, kind: output, shape index: {1}]  }
   0x1   :  { %10 = vsyncpa [#allocation6], 0 }
   0x2   :  { %11 = vsyncpa [#allocation4], 0 }
   0x3   :  { %12 = vsyncpa [#allocation9], 0  ;;  %s237_s12 = smov [#allocation2]   ;;  %s141_s16 = scalar_lea.hbm %s320_s0, 256 }
   0x4   :  { %s18_s13 = sshll.u32 %s237_s12, 4  ;;  %p142_p0 = scmp.ne.s32.totalorder %s320_s0, %s141_s16  ;;  %s19_s13 = int_to_ptr.vmem [resolvable:$true] %s18_s13 }
   0x5   :  { %p145_p1 = scmp.lt.u32.totalorder %s141_s16, %s320_s0 }
   0x7   :  { %p147_p2 = pnand %p145_p1, %p142_p0 }
   0x9   :  { %150 = shalt.err (!%p147_p2)
}
   0xa   :  { %s151_s21 = scalar_lea.vmem %s19_s13, 256  ;;  %p156_p4 = scmp.lt.s32.totalorder %s19_s13, %s19_s13 }
   0xb   :  { %p152_p3 = scmp.ne.s32.totalorder %s19_s13, %s151_s21  ;;  %p157_p5 = scmp.lt.s32.totalorder %s151_s21, %s151_s21 }
   0xd   :  { %p158_p6 = por %p157_p5, %p156_p4 }
   0xf   :  { %p159_p7 = pnand %p158_p6, %p152_p3 }
  0x11   :  { %162 = shalt.err (!%p159_p7)
}
  0x12   :  { %s238_s22 = smov 128   ;;  %s239_s23 = smov 8  }
  0x13   :  { %24 = dma.hbm_to_vmem [thread:$0]  %s320_s0, 256, %s19_s13, [#allocation3], %s238_s22, %s238_s22, %s239_s23  }
  0x14   :  { %s240_s26 = smov [#allocation5]   ;;  %s163_s30 = scalar_lea.hbm %s321_s1, 256 }
  0x15   :  { %s30_s27 = sshll.u32 %s240_s26, 4  ;;  %p164_p8 = scmp.ne.s32.totalorder %s321_s1, %s163_s30  ;;  %s31_s27 = int_to_ptr.vmem [resolvable:$true] %s30_s27 }
  0x16   :  { %p167_p9 = scmp.lt.u32.totalorder %s163_s30, %s321_s1 }
  0x18   :  { %p169_p10 = pnand %p167_p9, %p164_p8 }
  0x1a   :  { %172 = shalt.err (!%p169_p10)
}
  0x1b   :  { %s173_s8 = scalar_lea.vmem %s31_s27, 256  ;;  %p178_p12 = scmp.lt.s32.totalorder %s31_s27, %s31_s27 }
  0x1c   :  { %p174_p11 = scmp.ne.s32.totalorder %s31_s27, %s173_s8  ;;  %p179_p13 = scmp.lt.s32.totalorder %s173_s8, %s173_s8 }
  0x1e   :  { %p180_p0 = por %p179_p13, %p178_p12 }
  0x20   :  { %p181_p1 = pnand %p180_p0, %p174_p11 }
  0x22   :  { %184 = shalt.err (!%p181_p1)
}
  0x23   :  { %36 = dma.hbm_to_vmem [thread:$0]  %s321_s1, 256, %s31_s27, [#allocation6], %s238_s22, %s238_s22, %s239_s23  }
  0x24   :  { %229 = dma.done.wait [#allocation3], 256  }
  0x25   :  { %230 = vsyncadd [#allocation3], 4294967040 }
  0x26   :  { %231 = dma.done.wait [#allocation6], 256  }
  0x27   :  { %232 = vsyncadd [#allocation6], 4294967040  ;;  %v43_v0 = vld [vmem:[#allocation2] sm:$0xff]  ;;  %v44_v1 = vld [vmem:[#allocation2 + $0x8] sm:$0xff]  ;;  %s241_s1 = smov [#allocation7]  }
  0x28   :  { %v47_v2 = vadd.f32 1e-12, %v43_v0  ;;  %v48_v3 = vadd.f32 1e-12, %v44_v1  ;;  %v57_v4 = vsub.f32 1.0, %v43_v0  ;;  %v58_v5 = vsub.f32 1.0, %v44_v1 }
  0x29   :  { %v45_v8 = vld [vmem:[#allocation5] sm:$0xff]  ;;  %v46_v10 = vld [vmem:[#allocation5 + $0x8] sm:$0xff]  ;;  %s98_s10 = sshll.u32 %s241_s1, 4  ;;  %s99_s10 = int_to_ptr.vmem [resolvable:$true] %s98_s10 }
  0x2a   :  { %133 = vlog2.f32 %v47_v2  ;;  %v59_v6 = vadd.f32 1e-12, %v57_v4  ;;  %v60_v7 = vadd.f32 1e-12, %v58_v5  ;;  %v55_v14 = vsub.f32 1.0, %v45_v8  ;;  %s185_s11 = scalar_lea.vmem %s99_s10, 256  ;;  %p190_p3 = scmp.lt.s32.totalorder %s99_s10, %s99_s10 }
  0x2b   :  { %135 = vlog2.f32 %v48_v3  ;;  %v56_v16 = vsub.f32 1.0, %v46_v10  ;;  %p186_p2 = scmp.ne.s32.totalorder %s99_s10, %s185_s11  ;;  %p191_p4 = scmp.lt.s32.totalorder %s185_s11, %s185_s11 }
  0x2c   :  { %137 = vlog2.f32 %v59_v6 }
  0x2d   :  { %139 = vlog2.f32 %v60_v7  ;;  %p192_p5 = por %p191_p4, %p190_p3 }
  0x2f   :  { %p193_p6 = pnand %p192_p5, %p186_p2 }
  0x34   :  { %v134_v9 = vpop.eup %133 }
  0x35   :  { %v136_v11 = vpop.eup %135  ;;  %v50_v12 = vmul.f32 0.6931472, %v134_v9 }
  0x36   :  { %v52_v13 = vmul.f32 0.6931472, %v136_v11  ;;  %v138_v15 = vpop.eup %137 }
  0x37   :  { %v140_v17 = vpop.eup %139  ;;  %v53_v18 = vmul.f32 %v50_v12, %v45_v8  ;;  %v62_v19 = vmul.f32 0.6931472, %v138_v15 }
  0x38   :  { %v54_v20 = vmul.f32 %v52_v13, %v46_v10  ;;  %v64_v21 = vmul.f32 0.6931472, %v140_v17 }
  0x39   :  { %v65_v22 = vmul.f32 %v62_v19, %v55_v14 }
  0x3a   :  { %v66_v23 = vmul.f32 %v64_v21, %v56_v16 }
  0x3b   :  { %v67_v24 = vadd.f32 %v65_v22, %v53_v18 }
  0x3c   :  { %v68_v25 = vadd.f32 %v66_v23, %v54_v20 }
  0x3d   :  { %v69_v26 = vsub.f32 0.0, %v67_v24 }
  0x3e   :  { %v70_v27 = vsub.f32 0.0, %v68_v25 }
  0x3f   :  { %71 = vst [vmem:[#allocation7] sm:$0xff] %v69_v26 }
  0x40   :  { %v80_v28 = vadd.f32 %v70_v27, %v69_v26  ;;  %72 = vst [vmem:[#allocation7 + $0x8] sm:$0xff] %v70_v27 }
  0x42   :  { %81 = vadd.xlane.f32.xlu0 %v80_v28 }
  0x43   :  { %196 = shalt.err (!%p193_p6)
}
  0x44   :  { %s197_s14 = scalar_lea.hbm %s322_s2, 256 }
  0x45   :  { %p198_p7 = scmp.ne.s32.totalorder %s322_s2, %s197_s14  ;;  %p201_p8 = scmp.lt.u32.totalorder %s197_s14, %s322_s2 }
  0x47   :  { %p203_p9 = pnand %p201_p8, %p198_p7 }
  0x49   :  { %206 = shalt.err (!%p203_p9)
}
  0x4a   :  { %104 = dma.vmem_to_hbm [thread:$0]  %s99_s10, 256, %s322_s2, [#allocation4], %s238_s22, %s238_s22, %s239_s23   ;;  %v73_v36 = vlaneseq }
  0x4b   :  { %s242_s21 = smov [#allocation8]  }
  0x4c   :  { %v74_v37 = vshrl.u32 %v73_v36, 7  ;;  %v76_v38 = vand.u32 127, %v73_v36  ;;  %s111_s24 = sshll.u32 %s242_s21, 4  ;;  %s112_s24 = int_to_ptr.vmem [resolvable:$true] %s111_s24 }
  0x4d   :  { %s207_s2 = scalar_lea.vmem %s112_s24, 128  ;;  %p212_p11 = scmp.lt.s32.totalorder %s112_s24, %s112_s24 }
  0x4e   :  { %vm77_vm0 = vcmp.eq.s32.totalorder %v74_v37, 0  ;;  %vm78_vm1 = vcmp.eq.s32.totalorder %v76_v38, 0  ;;  %p208_p10 = scmp.ne.s32.totalorder %s112_s24, %s207_s2  ;;  %p213_p12 = scmp.lt.s32.totalorder %s207_s2, %s207_s2 }
  0x4f   :  { %vm79_vm2 = vmand %vm77_vm0, %vm78_vm1 }
  0x50   :  { %p214_p13 = por %p213_p12, %p212_p11 }
  0x52   :  { %p215_p0 = pnand %p214_p13, %p208_p10 }
  0xcf   :  { %v82_v29 = vpop.xlane.xlu0 %81 }
  0xd0   :  { %v83_v30 = vrot.slane %v82_v29, 4 }
  0xd2   :  { %v84_v31 = vadd.f32 %v83_v30, %v82_v29 }
  0xd4   :  { %v85_v32 = vrot.slane %v84_v31, 2 }
  0xd6   :  { %v86_v33 = vadd.f32 %v85_v32, %v84_v31 }
  0xd8   :  { %v87_v34 = vrot.slane %v86_v33, 1 }
  0xda   :  { %v88_v35 = vadd.f32 %v87_v34, %v86_v33 }
  0xdc   :  { %125 = vpush %v88_v35 }
 0x10d   :  { %s126_s25 = spop %125 }
 0x10e   :  { %v90_v39 = vstv %s126_s25 }
 0x10f   :  { %v91_v40 = vsel %vm79_vm2, %v90_v39, 0.0 }
 0x110   :  { %92 = vst [vmem:[#allocation8] sm:$0xff] %v91_v40 }
 0x111   :  { %218 = shalt.err (!%p215_p0)
}
 0x112   :  { %s219_s26 = scalar_lea.hbm %s323_s3, 128 }
 0x113   :  { %p220_p1 = scmp.ne.s32.totalorder %s323_s3, %s219_s26  ;;  %p223_p2 = scmp.lt.u32.totalorder %s219_s26, %s323_s3 }
 0x115   :  { %p225_p3 = pnand %p223_p2, %p220_p1 }
 0x117   :  { %228 = shalt.err (!%p225_p3)
}
 0x118   :  { %114 = dma.vmem_to_hbm [thread:$0]  %s112_s24, 128, %s323_s3, [#allocation9]  }
 0x119   :  { %233 = dma.done.wait [#allocation4], 256  }
 0x11a   :  { %234 = vsyncadd [#allocation4], 4294967040 }
 0x11b   :  { %235 = dma.done.wait [#allocation9], 128  }
 0x11c   :  { %236 = vsyncadd [#allocation9], 4294967168 }
 0x11d   :  { %121 = vsyncpa [#allocation3], 1 }
 0x11e   :  { %122 = vsyncpa [#allocation6], 1 }
 0x11f   :  { %123 = vsyncpa [#allocation4], 1 }
 0x120   :  { %124 = vsyncpa [#allocation9], 1 }

</bundles_post_ra>
